<compile_context>
chip_gen: v7x
topology: tpu7x:2x2x1
jax: 0.10.0
libtpu: 0.0.40
codegen_flags: <defaults>
</compile_context>

<pallas_src>
import functools

import jax
import jax.numpy as jnp
from jax import lax
from jax.experimental import pallas as pl
from jax.experimental.pallas import tpu as pltpu

LN_EPS = 1e-5  # nn.LayerNorm default


def _round_up(x, m):
    return (x + m - 1) // m * m


def sgu_kernel(u_ref, v_ref, w_ref, pb_ref, gamma_ref, beta_ref, o_ref, vn_ref,
               *, gate_dim, ln_chunk, bf16_epilogue):
    """One (batch, output-token-tile) grid step.

    u_ref:     (1, TN, Gp)  first channel half for this output-token tile (input dtype)
    v_ref:     (1, Np, Gp)  full gate half for this batch element (input dtype)
    w_ref:     (TN, Np)     spatial projection weight rows for this tile (bf16)
    pb_ref:    (TN, 1)      spatial projection bias for this tile (f32)
    gamma_ref: (1, Gp)      LN weight, zero-padded past gate_dim (f32)
    beta_ref:  (1, Gp)      LN bias,   zero-padded past gate_dim (f32)
    o_ref:     (1, TN, Gp)  output tile
    vn_ref:    (Np, Gp)     VMEM scratch: LN(v) in bf16, computed once per batch element
    """
    j = pl.program_id(1)

    # --- LayerNorm of the gate half: once per batch element (j == 0), reused by all token tiles.
    @pl.when(j == 0)
    def _():
        inv_g = 1.0 / gate_dim
        n_chunks = vn_ref.shape[0] // ln_chunk

        def ln_body(c, carry):
            off = pl.multiple_of(c * ln_chunk, ln_chunk)
            v = v_ref[0, pl.ds(off, ln_chunk), :].astype(jnp.float32)
            # Single-pass stats.  Padded channel lanes are zero, so they drop out of both sums;
            # divide by the real gate_dim.
            mean = jnp.sum(v, axis=-1, keepdims=True) * inv_g
            mean_sq = jnp.sum(v * v, axis=-1, keepdims=True) * inv_g
            var = jnp.maximum(mean_sq - mean * mean, 0.0)
            vn = (v - mean) * lax.rsqrt(var + LN_EPS)
            vn = vn * gamma_ref[...] + beta_ref[...]        # gamma/beta zero-padded -> padded lanes stay 0
            vn_ref[pl.ds(off, ln_chunk), :] = vn.astype(vn_ref.dtype)   # bf16 operand for the MXU
            return carry

        lax.fori_loop(0, n_chunks, ln_body, 0)

    # --- Spatial (token-mixing) projection on the MXU: (TN, Np) @ (Np, Gp) -> (TN, Gp), f32 acc.
    vp = jnp.dot(w_ref[...], vn_ref[...], preferred_element_type=jnp.float32)
    proj = vp + pb_ref[...]

    # --- Gating epilogue: u * (W @ LN(v) + b) in a single VPU pass.
    if bf16_epilogue:
        gated = u_ref[0] * proj.astype(jnp.bfloat16)        # native bf16 VALU on v6e/v7x
    else:
        gated = u_ref[0].astype(jnp.float32) * proj
    o_ref[0] = gated.astype(o_ref.dtype)


def spatial_gating_unit(x, proj_w, proj_b, ln_gamma, ln_beta, *, token_tile=None):
    """x: (B, N, D). proj_w: (N, N). proj_b: (N,). ln_gamma/ln_beta: (D//2,). Returns (B, N, D//2)."""
    B, N, D = x.shape
    G = D // 2
    dt = jnp.dtype(x.dtype)
    xb = dt.itemsize

    # ---- hardware query: VMEM capacity drives tile size / buffering choices ----
    try:
        vmem_cap = int(pltpu.get_tpu_info().vmem_capacity_bytes)
    except Exception:
        vmem_cap = 64 * 1024 * 1024            # conservative default (v7x: 64 MiB / TensorCore)

    if token_tile is None:
        token_tile = 512 if vmem_cap >= 100 * 1024 * 1024 else 256   # v5e/v6e: 128 MiB, v7x: 64 MiB

    # ---- dtype-aware sublane alignment and 128-granularity token padding ----
    sublane = max(8, 32 // max(xb, 1))         # 8 rows (f32), 16 (bf16), 32 (int8/fp8)
    Np = _round_up(N, sublane)
    if Np > token_tile:
        Np = _round_up(N, 128)                 # round to the next 128 tokens, NOT to a token_tile multiple
        TN = 128
        for cand in (512, 256, 128):
            if cand <= token_tile and Np % cand == 0:
                TN = cand
                break
    else:
        TN = Np
    n_tiles = Np // TN
    pad_tok = Np - N

    # ---- u / v inputs: never materialize a padded+concatenated copy of x ----
    if G % 128 == 0:
        # Channel split handled purely by the BlockSpecs: x passed twice (channel-block 0 / 1).
        Gp = G
        x_in = jnp.pad(x, ((0, 0), (0, pad_tok), (0, 0))) if pad_tok else x
        u_in, v_in = x_in, x_in
        u_chan, v_chan = 0, 1
    else:
        # Channel padding genuinely needed for lane-dense tiles: pass the halves as two arrays.
        Gp = _round_up(G, 128)
        u_in = jnp.pad(x[..., :G], ((0, 0), (0, pad_tok), (0, Gp - G)))
        v_in = jnp.pad(x[..., G:], ((0, 0), (0, pad_tok), (0, Gp - G)))
        u_chan, v_chan = 0, 0

    # bf16 MXU weight; padded W rows/columns are zero, so padded tokens (whose LN(v) row evaluates
    # to beta) never contribute to real outputs, and padded output rows are sliced off below.
    w_pad = jnp.pad(proj_w, ((0, pad_tok), (0, pad_tok))).astype(jnp.bfloat16)
    pb_pad = jnp.pad(proj_b, (0, pad_tok)).reshape(Np, 1).astype(jnp.float32)
    gamma_pad = jnp.pad(ln_gamma, (0, Gp - G)).reshape(1, Gp).astype(jnp.float32)
    beta_pad = jnp.pad(ln_beta, (0, Gp - G)).reshape(1, Gp).astype(jnp.float32)

    # LN row-chunk: bounds live f32 temporaries to ln_chunk * Gp.
    if Np % 256 == 0 and Np > 256:
        ln_chunk = 256
    elif Np % 128 == 0 and Np > 128:
        ln_chunk = 128
    else:
        ln_chunk = Np

    # The v block index is constant across the token-tile axis, so double-buffering it only buys
    # cross-batch prefetch; drop to a single buffer when the double-buffered v + the LN(v) scratch
    # would crowd VMEM (matters on v7x's 64 MiB per TensorCore).
    v_bytes = Np * Gp * xb
    vn_bytes = Np * Gp * 2
    v_single_buf = (2 * v_bytes + vn_bytes) > int(0.35 * vmem_cap)

    v_map = lambda b, j: (b, 0, v_chan)
    if v_single_buf:
        v_spec = pl.BlockSpec((1, Np, Gp), v_map, pipeline_mode=pl.Buffered(1))
        v_bufs = 1
    else:
        v_spec = pl.BlockSpec((1, Np, Gp), v_map)
        v_bufs = 2

    # Explicit VMEM budget with slack, capped well below physical capacity.
    est = (2 * TN * Gp * xb           # u blocks (double-buffered)
           + v_bufs * v_bytes         # v blocks
           + 2 * TN * Np * 2          # W blocks (bf16)
           + 2 * TN * 4               # bias blocks
           + 2 * TN * Gp * xb         # output blocks
           + vn_bytes                 # LN(v) scratch (bf16)
           + 4 * ln_chunk * Gp * 4    # chunked f32 LN temporaries
           + 2 * TN * Gp * 4)         # f32 matmul result + epilogue temporaries
    vmem_limit = int(min(max(2 * est, 16 * 1024 * 1024), int(0.8 * vmem_cap)))

    kernel = functools.partial(
        sgu_kernel, gate_dim=G, ln_chunk=ln_chunk, bf16_epilogue=(dt == jnp.bfloat16))

    out_pad = pl.pallas_call(
        kernel,
        out_shape=jax.ShapeDtypeStruct((B, Np, Gp), x.dtype),
        grid_spec=pltpu.PrefetchScalarGridSpec(
            num_scalar_prefetch=0,
            grid=(B, n_tiles),
            in_specs=[
                # u half: only the rows of this output-token tile (channel split at the BlockSpec).
                pl.BlockSpec((1, TN, Gp), lambda b, j: (b, j, u_chan)),
                # v half: full sequence for this batch element (needed by the token-mixing matmul).
                v_spec,
                # spatial projection weight / bias rows for this token tile.
                pl.BlockSpec((TN, Np), lambda b, j: (j, 0)),
                pl.BlockSpec((TN, 1), lambda b, j: (j, 0)),
                pl.BlockSpec((1, Gp), lambda b, j: (0, 0)),
                pl.BlockSpec((1, Gp), lambda b, j: (0, 0)),
            ],
            out_specs=pl.BlockSpec((1, TN, Gp), lambda b, j: (b, j, 0)),
            scratch_shapes=[pltpu.VMEM((Np, Gp), jnp.bfloat16)],
        ),
        compiler_params=pltpu.CompilerParams(
            # Batch axis shards across TensorCores; the token-tile axis must stay sequential
            # ("arbitrary") because the LN(v) scratch written at j == 0 is reused by later tiles.
            dimension_semantics=("parallel", "arbitrary"),
            vmem_limit_bytes=vmem_limit,
        ),
    )(u_in, v_in, w_pad, pb_pad, gamma_pad, beta_pad)

    if pad_tok or Gp != G:
        out_pad = out_pad[:, :N, :G]
    return out_pad


def spatial_gating_unit_ref(x, proj_w, proj_b, ln_gamma, ln_beta):
    """Pure-JAX f32 reference mirroring the PyTorch forward."""
    G = x.shape[-1] // 2
    u, v = x[..., :G], x[..., G:]
    mean = jnp.mean(v, axis=-1, keepdims=True)
    var = jnp.mean((v - mean) ** 2, axis=-1, keepdims=True)
    vn = (v - mean) / jnp.sqrt(var + LN_EPS) * ln_gamma + ln_beta
    vp = jnp.einsum("nm,bmc->bnc", proj_w, vn) + proj_b[None, :, None]
    return u * vp


if __name__ == "__main__":
    # Small shapes consistent with the module: dim=32 (gate_dim=16), seq_len=8, batch=2.
    B, N, D = 2, 8, 32
    G = D // 2

    key = jax.random.PRNGKey(0)
    kx, kw, kb = jax.random.split(key, 3)

    x = jax.random.normal(kx, (B, N, D), dtype=jnp.float32)

    # Moderate-scale weights so the spatial matmul actually contributes to the output
    # (the module's init_weights() uses std=1e-6, which would hide the matmul entirely).
    proj_w = 0.1 * jax.random.normal(kw, (N, N), dtype=jnp.float32)
    proj_b = 1.0 + 0.05 * jax.random.normal(kb, (N,), dtype=jnp.float32)
    ln_gamma = jnp.ones((G,), dtype=jnp.float32)
    ln_beta = jnp.zeros((G,), dtype=jnp.float32)

    out = spatial_gating_unit(x, proj_w, proj_b, ln_gamma, ln_beta)
    out = jax.block_until_ready(out)

    ref = spatial_gating_unit_ref(x, proj_w, proj_b, ln_gamma, ln_beta)
    assert out.shape == (B, N, G), out.shape
    # bf16 MXU operands => relaxed tolerance vs. the pure-f32 reference.
    err = float(jnp.max(jnp.abs(out - ref)))
    assert jnp.allclose(out, ref, atol=3e-2, rtol=3e-2), f"mismatch vs reference, max abs err={err}"

    print("KERNEL_OK")
</pallas_src>

<mosaic_0001>
module attributes {stable_mosaic.version = 11 : i64} {
  func.func @sgu_kernel(%arg0: i32, %arg1: i32, %arg2: memref<1x8x128xf32, #tpu.memory_space<vmem>>, %arg3: memref<1x8x128xf32, #tpu.memory_space<vmem>>, %arg4: memref<8x8xbf16, #tpu.memory_space<vmem>>, %arg5: memref<8x1xf32, #tpu.memory_space<vmem>>, %arg6: memref<1x128xf32, #tpu.memory_space<vmem>>, %arg7: memref<1x128xf32, #tpu.memory_space<vmem>>, %arg8: memref<1x8x128xf32, #tpu.memory_space<vmem>>, %arg9: memref<8x128xbf16, #tpu.memory_space<vmem>>) attributes {dimension_semantics = [#tpu.dimension_semantics<parallel>, #tpu.dimension_semantics<arbitrary>], iteration_bounds = array<i64: 2, 1>, scalar_prefetch = 0 : i64, scratch_operands = 1 : i64, tpu.core_type = #tpu.core_type<tc>, window_params = [{transform_indices = @transform_0, window_bounds = array<i64: 1, 8, 128>}, {transform_indices = @transform_1, window_bounds = array<i64: 1, 8, 128>}, {transform_indices = @transform_2, window_bounds = array<i64: 8, 8>}, {transform_indices = @transform_3, window_bounds = array<i64: 8, 1>}, {pipeline_mode = #tpu.pipeline_mode<synchronous>, transform_indices = @transform_4, window_bounds = array<i64: 1, 128>}, {pipeline_mode = #tpu.pipeline_mode<synchronous>, transform_indices = @transform_5, window_bounds = array<i64: 1, 128>}, {transform_indices = @transform_6, window_bounds = array<i64: 1, 8, 128>}]} {
    %c0_i32 = arith.constant 0 : i32
    %0 = arith.cmpi eq, %arg1, %c0_i32 : i32
    %1 = arith.extui %0 : i1 to i32
    %c0_i32_0 = arith.constant 0 : i32
    %2 = arith.cmpi ne, %1, %c0_i32_0 : i32
    scf.if %2 {
      %c0_i32_12 = arith.constant 0 : i32
      %c8_i32 = arith.constant 8 : i32
      %15 = arith.muli %c0_i32_12, %c8_i32 : i32
      %16 = tpu.assume_multiple %15, 8 : i32
      %c0_13 = arith.constant 0 : index
      %17 = arith.index_cast %16 : i32 to index
      %c0_14 = arith.constant 0 : index
      %18 = vector.load %arg3[%c0_13, %17, %c0_14] : memref<1x8x128xf32, #tpu.memory_space<vmem>>, vector<1x8x128xf32>
      %19 = vector.shape_cast %18 : vector<1x8x128xf32> to vector<8x128xf32>
      %cst_15 = arith.constant dense<0.000000e+00> : vector<8xf32>
      %20 = vector.multi_reduction <add>, %19, %cst_15 [1] : vector<8x128xf32> to vector<8xf32>
      %21 = vector.shape_cast %20 : vector<8xf32> to vector<8x1xf32>
      %cst_16 = arith.constant 6.250000e-02 : f32
      %22 = vector.broadcast %cst_16 : f32 to vector<8x1xf32>
      %23 = arith.mulf %21, %22 : vector<8x1xf32>
      %24 = arith.mulf %19, %19 : vector<8x128xf32>
      %cst_17 = arith.constant dense<0.000000e+00> : vector<8xf32>
      %25 = vector.multi_reduction <add>, %24, %cst_17 [1] : vector<8x128xf32> to vector<8xf32>
      %26 = vector.shape_cast %25 : vector<8xf32> to vector<8x1xf32>
      %cst_18 = arith.constant 6.250000e-02 : f32
      %27 = vector.broadcast %cst_18 : f32 to vector<8x1xf32>
      %28 = arith.mulf %26, %27 : vector<8x1xf32>
      %29 = arith.mulf %23, %23 : vector<8x1xf32>
      %30 = arith.subf %28, %29 : vector<8x1xf32>
      %cst_19 = arith.constant 0.000000e+00 : f32
      %31 = vector.broadcast %cst_19 : f32 to vector<8x1xf32>
      %32 = arith.maximumf %30, %31 : vector<8x1xf32>
      %33 = vector.broadcast %23 : vector<8x1xf32> to vector<8x128xf32>
      %34 = arith.subf %19, %33 : vector<8x128xf32>
      %cst_20 = arith.constant 9.99999974E-6 : f32
      %35 = vector.broadcast %cst_20 : f32 to vector<8x1xf32>
      %36 = arith.addf %32, %35 : vector<8x1xf32>
      %37 = math.rsqrt %36 : vector<8x1xf32>
      %38 = vector.broadcast %37 : vector<8x1xf32> to vector<8x128xf32>
      %39 = arith.mulf %34, %38 : vector<8x128xf32>
      %c0_21 = arith.constant 0 : index
      %c0_22 = arith.constant 0 : index
      %40 = vector.load %arg6[%c0_21, %c0_22] : memref<1x128xf32, #tpu.memory_space<vmem>>, vector<1x128xf32>
      %41 = vector.broadcast %40 : vector<1x128xf32> to vector<8x128xf32>
      %42 = arith.mulf %39, %41 : vector<8x128xf32>
      %c0_23 = arith.constant 0 : index
      %c0_24 = arith.constant 0 : index
      %43 = vector.load %arg7[%c0_23, %c0_24] : memref<1x128xf32, #tpu.memory_space<vmem>>, vector<1x128xf32>
      %44 = vector.broadcast %43 : vector<1x128xf32> to vector<8x128xf32>
      %45 = arith.addf %42, %44 : vector<8x128xf32>
      %46 = arith.truncf %45 : vector<8x128xf32> to vector<8x128xbf16>
      %47 = arith.index_cast %16 : i32 to index
      %c0_25 = arith.constant 0 : index
      %48 = vector.load %arg9[%47, %c0_25] : memref<8x128xbf16, #tpu.memory_space<vmem>>, vector<8x128xbf16>
      tpu.vector_store %arg9[%47, %c0_25], %46 {strides = array<i32>} : memref<8x128xbf16, #tpu.memory_space<vmem>>, vector<8x128xbf16>,
      %c1_i32 = arith.constant 1 : i32
    } else {
    }
    %c0 = arith.constant 0 : index
    %c0_1 = arith.constant 0 : index
    %3 = vector.load %arg4[%c0, %c0_1] : memref<8x8xbf16, #tpu.memory_space<vmem>>, vector<8x8xbf16>
    %c0_2 = arith.constant 0 : index
    %c0_3 = arith.constant 0 : index
    %4 = vector.load %arg9[%c0_2, %c0_3] : memref<8x128xbf16, #tpu.memory_space<vmem>>, vector<8x128xbf16>
    %cst = arith.constant dense<0.000000e+00> : vector<8x128xf32>
    %5 = tpu.matmul %3, %4, %cst {dimension_numbers = #tpu.dot_dimension_numbers<[1], [0], [0], [1], [0, 0, 1, 1], [], []>} : vector<8x8xbf16>, vector<8x128xbf16>, vector<8x128xf32> -> vector<8x128xf32>
    %c0_4 = arith.constant 0 : index
    %c0_5 = arith.constant 0 : index
    %6 = vector.load %arg5[%c0_4, %c0_5] : memref<8x1xf32, #tpu.memory_space<vmem>>, vector<8x1xf32>
    %7 = vector.broadcast %6 : vector<8x1xf32> to vector<8x128xf32>
    %8 = arith.addf %5, %7 : vector<8x128xf32>
    %c0_6 = arith.constant 0 : index
    %c0_7 = arith.constant 0 : index
    %c0_8 = arith.constant 0 : index
    %9 = vector.load %arg2[%c0_6, %c0_7, %c0_8] : memref<1x8x128xf32, #tpu.memory_space<vmem>>, vector<1x8x128xf32>
    %10 = vector.shape_cast %9 : vector<1x8x128xf32> to vector<8x128xf32>
    %11 = arith.mulf %10, %8 : vector<8x128xf32>
    %c0_9 = arith.constant 0 : index
    %c0_10 = arith.constant 0 : index
    %c0_11 = arith.constant 0 : index
    %12 = vector.load %arg8[%c0_9, %c0_10, %c0_11] : memref<1x8x128xf32, #tpu.memory_space<vmem>>, vector<1x8x128xf32>
    %13 = vector.shape_cast %12 : vector<1x8x128xf32> to vector<8x128xf32>
    %14 = vector.shape_cast %11 : vector<8x128xf32> to vector<1x8x128xf32>
    tpu.vector_store %arg8[%c0_9, %c0_10, %c0_11], %14 {strides = array<i32>} : memref<1x8x128xf32, #tpu.memory_space<vmem>>, vector<1x8x128xf32>,
    return
  }
  func.func @transform_0(%arg0: i32, %arg1: i32) -> (i32, i32, i32) {
    %c0_i32 = arith.constant 0 : i32
    %c0_i32_0 = arith.constant 0 : i32
    return %arg0, %arg1, %c0_i32 : i32, i32, i32
  }
  func.func @transform_1(%arg0: i32, %arg1: i32) -> (i32, i32, i32) {
    %c0_i32 = arith.constant 0 : i32
    %c0_i32_0 = arith.constant 0 : i32
    %c0_i32_1 = arith.constant 0 : i32
    return %arg0, %c0_i32, %c0_i32_0 : i32, i32, i32
  }
  func.func @transform_2(%arg0: i32, %arg1: i32) -> (i32, i32) {
    %c0_i32 = arith.constant 0 : i32
    %c0_i32_0 = arith.constant 0 : i32
    return %arg1, %c0_i32 : i32, i32
  }
  func.func @transform_3(%arg0: i32, %arg1: i32) -> (i32, i32) {
    %c0_i32 = arith.constant 0 : i32
    %c0_i32_0 = arith.constant 0 : i32
    return %arg1, %c0_i32 : i32, i32
  }
  func.func @transform_4(%arg0: i32, %arg1: i32) -> (i32, i32) {
    %c0_i32 = arith.constant 0 : i32
    %c0_i32_0 = arith.constant 0 : i32
    %c0_i32_1 = arith.constant 0 : i32
    return %c0_i32, %c0_i32_0 : i32, i32
  }
  func.func @transform_5(%arg0: i32, %arg1: i32) -> (i32, i32) {
    %c0_i32 = arith.constant 0 : i32
    %c0_i32_0 = arith.constant 0 : i32
    %c0_i32_1 = arith.constant 0 : i32
    return %c0_i32, %c0_i32_0 : i32, i32
  }
  func.func @transform_6(%arg0: i32, %arg1: i32) -> (i32, i32, i32) {
    %c0_i32 = arith.constant 0 : i32
    %c0_i32_0 = arith.constant 0 : i32
    return %arg0, %arg1, %c0_i32 : i32, i32, i32
  }
}

</mosaic_0001>

<bundles_post_ra>
// kernel: tpu_custom_call.1
= control target key start
LH: loop header
LB: loop body
LE: loop exit
PB: predicated region body
PF: predicated region fallthrough
CT: control target
= control target key end

     0   :  { %s1131_s0 = inlined_call_operand.hbm [shape: f32[2,8,128], index: 0, kind: input, shape index: {}]   ;;  %s1132_s1 = inlined_call_operand.hbm [shape: f32[2,8,128], index: 1, kind: input, shape index: {}]   ;;  %s1133_s2 = inlined_call_operand.vmem [shape: bf16[8,8], index: 2, kind: input, shape index: {}]   ;;  %s1134_s3 = inlined_call_operand.vmem [shape: f32[8,1], index: 3, kind: input, shape index: {}]   ;;  %s1135_s4 = inlined_call_operand.vmem [shape: f32[1,128], index: 4, kind: input, shape index: {}]   ;;  %s1136_s5 = inlined_call_operand.vmem [shape: f32[1,128], index: 5, kind: input, shape index: {}]   ;;  %s1137_s6 = inlined_call_operand.hbm [shape: f32[2,8,128], index: 6, kind: output, shape index: {}]  }
   0x1   :  { %1141 = sst [smem:[#allocation12_spill]] %s1131_s0 }
   0x2   :  { %11 = vsyncpa [#allocation4], 0 }
   0x3   :  { %13 = vsyncpa [#allocation4 + $0x1], 0 }
   0x4   :  { %14 = vsyncpa [#allocation7], 0 }
   0x5   :  { %16 = vsyncpa [#allocation7 + $0x1], 0 }
   0x6   :  { %17 = vsyncpa [#allocation5], 0 }
   0x7   :  { %19 = vsyncpa [#allocation5 + $0x1], 0  ;;  %s892_s21 = smov 0   ;;  %s894_s22 = smov 0  }
   0x8   :  { %s896_s23 = smov 0   ;;  %s898_s24 = smov 0  }
   0x9   :  { %s900_s25 = smov 0   ;;  %s902_s26 = smov 0  }
   0xa LB: > { %s600_s27 = sadd.s32 4294967295, %s849_s26   ;;  %s601_s28 = sadd.s32 4294967294, %s849_s26   ;;  %s849_s26 = sphi %s902_s26, %s25_s26   ;;  %s845_s25 = sphi %s900_s25, %s1161_s25   ;;  %s841_s24 = sphi %s898_s24, %s1160_s24   ;;  %s837_s23 = sphi %s896_s23, %s1159_s23   ;;  %s833_s22 = sphi %s894_s22, %s1158_s22   ;;  %s829_s21 = sphi %s892_s21, %s1157_s21  }
   0xb   : > { %s37_s29 = sadd.s32 1, %s845_s25  ;;  %s46_s30 = sadd.s32 1, %s837_s23 }
   0xc   : > { %p39_p0 = scmp.ge.s32.totalorder %s37_s29, 2  ;;  %p53_p1 = scmp.ne.s32.totalorder %s837_s23, %s833_s22 }
   0xd   : > { %p54_p2 = scmp.eq.s32.totalorder %s849_s26, 0  ;;  %p59_p3 = scmp.ne.s32.totalorder %s833_s22, %s829_s21 }
   0xe   : > { %s1163_s29 = smov (%p39_p0, %s37_s29), 0  ;;  %p60_p5 = scmp.eq.s32.totalorder %s600_s27, 0 }
   0xf   : > { %p933_p4 = por %p54_p2, %p53_p1  ;;  %s41_s8 = ssub.s32 %s845_s25, %s1163_s29 }
  0x10   : > { %p205_p6 = scmp.eq.s32.totalorder %s600_s27, 1  ;;  %p44_p7 = scmp.eq.s32.totalorder %s41_s8, 0 }
  0x11   : > { %p939_p8 = por %p60_p5, %p59_p3  ;;  %p211_p10 = scmp.eq.s32.totalorder %s601_s28, 1 }
  0x12   : > { %p943_p9 = por %p205_p6, %p53_p1  ;;  %p646_p13 = scmp.lt.s32.totalorder %s849_s26, 2 }
  0x13   : > { %s1143_s9 = scalar_select %p939_p8, 1, 0 }
  0x14   : > { %s1144_s10 = scalar_select %p943_p9, 1, 0 }
  0x15   : > { %s948_s11 = scalar_select %p44_p7, %s837_s23, %s46_s30  }
  0x16   : > { %p950_p11 = por %p211_p10, %p59_p3  ;;  %s957_s13 = sand.u32 1, %s837_s23  }
  0x17   : > { %s1138_s14 = sshll.u32 %s957_s13, 3  ;;  %s607_s15 = sshll.u32 %s845_s25, 7 }
  0x18   : > { %s1145_s12 = scalar_select %p950_p11, 1, 0 }
  0x19   : > { %s1146_s0 = sld [smem:[#allocation12_spill]]  ;;  %s255_s19 = scalar_lea.vmem [#allocation3], %s1138_s14 }
  0x1a   : > { %s263_s20 = sshll.u32 %s255_s19, 4  ;;  %p974_p0 = pnand %p646_p13, %p933_p4  ;;  %s970_s20 = int_to_ptr.vmem [resolvable:$true] %s263_s20 }
  0x1b   : > { %s252_s28 = scalar_lea.sflag [#allocation4], %s957_s13 }
  0x1c   : > { %p705_p5 = pneg %p974_p0 }
  0x1f   : > { %s966_s18 = scalar_lea.hbm %s1146_s0, %s607_s15  ;;  %s708_s7 = scalar_lea.hbm %s1146_s0, 256 }
  0x20   : > { %s703_s30 = scalar_lea.hbm %s966_s18, 128  ;;  %p709_p4 = scmp.lt.u32.totalorder %s966_s18, %s1146_s0 }
  0x21   : > { %p704_p3 = scmp.ne.s32.totalorder %s966_s18, %s703_s30  ;;  %p710_p10 = scmp.lt.u32.totalorder %s708_s7, %s703_s30 }
  0x22   : > { %p712_p12 = scmp.lt.u32.totalorder %s703_s30, %s966_s18 }
  0x23   : > { %p706_p6 = pnand %p705_p5, %p704_p3  ;;  %p711_p13 = por %p710_p10, %p709_p4 }
  0x25   : > { %p707_p7 = pneg %p706_p6  ;;  %p713_p1 = por %p712_p12, %p711_p13 }
  0x27   : > { %p714_p2 = pnand %p713_p1, %p707_p7 }
  0x29   : > { %717 = shalt.err (!%p714_p2)
}
  0x2a   : > { %s718_s14 = scalar_lea.vmem %s970_s20, 128  ;;  %s851_s8 = smov [#allocation3]  }
  0x2b   : > { %p719_p3 = scmp.ne.s32.totalorder %s970_s20, %s718_s14  ;;  %s723_s16 = sshll.u32 %s851_s8, 4  ;;  %s724_s16 = int_to_ptr.vmem [resolvable:$false] %s723_s16 }
  0x2c   : > { %s725_s17 = scalar_lea.vmem %s724_s16, 256  ;;  %p726_p9 = scmp.lt.s32.totalorder %s970_s20, %s724_s16 }
  0x2d   : > { %p721_p6 = pnand %p719_p3, %p705_p5  ;;  %p727_p4 = scmp.lt.s32.totalorder %s725_s17, %s718_s14 }
  0x2f   : > { %p722_p11 = pneg %p721_p6  ;;  %p728_p10 = por %p727_p4, %p726_p9 }
  0x31   : > { %p729_p12 = pnand %p728_p10, %p722_p11 }
  0x33   : > { %732 = shalt.err (!%p729_p12)
}
  0x34   : > { %638 = dma.hbm_to_vmem [thread:$0]  (!%p974_p0), %s966_s18, 128, %s970_s20, %s252_s28  }
  0x35   : > { %p1148_p1 = scmp.lt.s32.totalorder %s849_s26, 3  ;;  %p1149_p2 = scmp.ge.s32.totalorder %s849_s26, 1 }
  0x36   : > { %s1019_s19 = scalar_lea.hbm %s1132_s1, %s607_s15  ;;  %s1151_s8 = sshll.u32 %s957_s13, 3 }
  0x37   : > { %p1010_p7 = pnand %p1149_p2, %p1148_p1  ;;  %s274_s16 = scalar_lea.vmem [#allocation6], %s1151_s8 }
  0x38   : > { %s281_s17 = sshll.u32 %s274_s16, 4  ;;  %s271_s18 = scalar_lea.sflag [#allocation7], %s957_s13  ;;  %s282_s17 = int_to_ptr.vmem [resolvable:$true] %s281_s17 }
  0x39   : > { %s1150_s30 = scalar_select %p1010_p7, 1, 0 }
  0x3a   : > { %s733_s20 = scalar_lea.hbm %s1019_s19, 128  ;;  %s738_s15 = scalar_lea.hbm %s1132_s1, 256 }
  0x3b   : > { %p734_p9 = scmp.ne.s32.totalorder %s1019_s19, %s733_s20  ;;  %p739_p3 = scmp.lt.u32.totalorder %s1019_s19, %s1132_s1 }
  0x3c   : > { %p740_p6 = scmp.lt.u32.totalorder %s738_s15, %s733_s20  ;;  %p742_p10 = scmp.lt.u32.totalorder %s733_s20, %s1019_s19 }
  0x3d   : > { %p736_p11 = pnand %p734_p9, %p705_p5 }
  0x3e   : > { %p741_p4 = por %p740_p6, %p739_p3 }
  0x3f   : > { %p737_p13 = pneg %p736_p11 }
  0x40   : > { %p743_p12 = por %p742_p10, %p741_p4 }
  0x42   : > { %p744_p1 = pnand %p743_p12, %p737_p13 }
  0x44   : > { %747 = shalt.err (!%p744_p1)
}
  0x45   : > { %s748_s13 = scalar_lea.vmem %s282_s17, 128  ;;  %s852_s8 = smov [#allocation6]  }
  0x46   : > { %p749_p2 = scmp.ne.s32.totalorder %s282_s17, %s748_s13  ;;  %s753_s0 = sshll.u32 %s852_s8, 4  ;;  %s754_s0 = int_to_ptr.vmem [resolvable:$false] %s753_s0 }
  0x47   : > { %s755_s16 = scalar_lea.vmem %s754_s0, 256  ;;  %p756_p8 = scmp.lt.s32.totalorder %s282_s17, %s754_s0 }
  0x48   : > { %p751_p9 = pnand %p749_p2, %p705_p5  ;;  %p757_p7 = scmp.lt.s32.totalorder %s755_s16, %s748_s13 }
  0x4a   : > { %p752_p11 = pneg %p751_p9  ;;  %p758_p3 = por %p757_p7, %p756_p8 }
  0x4c   : > { %p759_p6 = pnand %p758_p3, %p752_p11 }
  0x4e   : > { %762 = shalt.err (!%p759_p6)
}
  0x4f   : > { %641 = dma.hbm_to_vmem [thread:$0]  (!%p974_p0), %s1019_s19, 128, %s282_s17, %s271_s18  }
  0x50   : > { %p1152_p13 = scmp.ne.s32.totalorder %s1150_s30, 0 }
  0x51   : > { %s1046_s20 = sand.u32 (!%p1152_p13), 1, %s833_s22   ;;  %p1153_p8 = scmp.ne.s32.totalorder (!%p1152_p13), %s1143_s9, 0 }
  0x52   : > { %290 = sbr.rel (%p1152_p13) target bundleno = 508 (0x1fc), region = 44  ;;  %s1049_s28 = sshll.u32 (!%p1152_p13), %s1046_s20, 3 }
  0x53   : > { %s293_s15 = scalar_lea.sflag (!%p1152_p13), [#allocation4], %s1046_s20  ;;  %s296_s14 = scalar_lea.vmem (!%p1152_p13), [#allocation3], %s1049_s28 }
  0x59   : > { %816 = dma.done.wait (%p1153_p8), %s293_s15, 128  }
  0x5a   : > { %818 = vsyncadd (%p1153_p8), %s293_s15, 4294967168  ;;  %s302_s27 = scalar_lea.sflag [#allocation7], %s1046_s20  ;;  %s305_s30 = scalar_lea.vmem [#allocation6], %s1049_s28 }
  0x5b   : > { %820 = dma.done.wait (%p1153_p8), %s302_s27, 128  }
  0x5c   : > { %822 = vsyncadd (%p1153_p8), %s302_s27, 4294967168  ;;  %v360_v0 = vld [vmem:[%s305_s30] sm:$0xff]  ;;  %v853_v2 = vmov 0.0   ;;  %vm854_vm0 = vmmov 0   ;;  %v855_v4 = vmov 0   ;;  %vm405_vm1 = vcmask 1043456  }
  0x5d   : > { %361 = vadd.xlane.f32.xlu0 %v360_v0  ;;  %v364_v1 = vmul.f32 %v360_v0, %v360_v0  ;;  %623 = vmatprep.subr.bf16.mxu0 %v853_v2  ;;  %v395_v3 = vld [vmem:[%s1134_s3] sm:$0xff]  ;;  %vm401_vm2 = vcmask 64512   ;;  %s618_s16 = sshll.u32 %s841_s24, 7  ;;  %s346_s15 = scalar_lea.vmem [#allocation8], %s1049_s28 }
  0x5e   : > { %625 = vmatprep.mubr.msk.bf16.mxu0 %vm854_vm0, %v853_v2  ;;  %699 = vset.pattern.permute.xlu1 %v855_v4  ;;  %v614_v15 = vld [vmem:[%s1135_s4] ss:$0 sm:$0xff]  ;;  %v449_v26 = vld [vmem:[%s296_s14] sm:$0xff]  ;;  %s467_s27 = sshll.u32 %s346_s15, 4  ;;  %s1082_s17 = scalar_lea.hbm %s1137_s6, %s618_s16  ;;  %s1084_s27 = int_to_ptr.vmem [resolvable:$true] %s467_s27 }
  0x5f   : > { %700 = vset.pattern.permute.xlu0 %v855_v4  ;;  %398 = vperm.xlu1 %699, %v395_v3   ;;  %v615_v17 = vld [vmem:[%s1136_s5] ss:$0 sm:$0xff]  ;;  %s453_s14 = scalar_lea.sflag [#allocation5], %s1046_s20  ;;  %s763_s24 = scalar_lea.vmem %s1084_s27, 128 }
  0x60   : > { %v393_v23 = vld [vmem:[%s1133_s2] sm:$0xf]  ;;  %p764_p0 = scmp.ne.s32.totalorder %s1084_s27, %s763_s24  ;;  %p1154_p5 = scmp.ne.s32.totalorder %s1144_s10, 0 }
  0x61   : > { %365 = vadd.xlane.f32.xlu0 %v364_v1  ;;  %s856_s28 = smov [#allocation8]  }
  0x62   : > { %p765_p7 = pnand %p764_p0, %p1154_p5  ;;  %s767_s9 = sshll.u32 %s856_s28, 4  ;;  %s768_s9 = int_to_ptr.vmem [resolvable:$false] %s767_s9 }
  0x63   : > { %s769_s18 = scalar_lea.vmem %s768_s9, 256  ;;  %p770_p10 = scmp.lt.s32.totalorder %s1084_s27, %s768_s9 }
  0x64   : > { %p766_p4 = pneg %p765_p7  ;;  %p771_p12 = scmp.lt.s32.totalorder %s769_s18, %s763_s24 }
  0x66   : > { %p772_p1 = por %p771_p12, %p770_p10 }
  0x68   : > { %p773_p2 = pnand %p772_p1, %p766_p4 }
  0xde   : > { %v399_v24 = vpop.permute.xlu1 %398 }
  0xea   : > { %v362_v5 = vpop.xlane.xlu0 %361 }
  0xeb   : > { %v363_v6 = vmul.f32 0.0625, %v362_v5 }
  0xed   : > { %v368_v8 = vmul.f32 %v363_v6, %v363_v6  ;;  %v371_v13 = vsub.f32 %v360_v0, %v363_v6 }
  0xee   : > { %v366_v7 = vpop.xlane.xlu0 %365 }
  0xef   : > { %v367_v9 = vmul.f32 0.0625, %v366_v7 }
  0xf1   : > { %v369_v10 = vsub.f32 %v367_v9, %v368_v8 }
  0xf3   : > { %v370_v11 = vmax.f32 %v369_v10, 0.0 }
  0xf5   : > { %v372_v12 = vadd.f32 1e-05, %v370_v11 }
  0xf7   : > { %701 = vrsqrt.f32 %v372_v12 }
 0x101   : > { %v702_v14 = vpop.eup %701 }
 0x102   : > { %v374_v16 = vmul.f32 %v702_v14, %v371_v13 }
 0x104   : > { %v382_v18 = vmul.f32 %v614_v15, %v374_v16 }
 0x106   : > { %v390_v19 = vadd.f32 %v615_v17, %v382_v18 }
 0x108   : > { %v391_v20 = vpack.c.bf16 %v390_v19, %v390_v19 }
 0x10a   : > { %392 = vst [vmem:[#allocation2] sm:$0xf] %v391_v20 }
 0x111   : > { %v394_v21 = vld [vmem:[#allocation2] sm:$0xf] }
 0x112   : > { %v407_v22 = vsel %vm405_vm1, %v394_v21, 0 }
 0x113   : > { %624 = vmatpush3.bf16.msra.mxu0 %v407_v22 }
 0x116   : > { %626 = vmatmul.mubr.msk.bf16.vlgmr.msra.gmra.mrb[0].mxu0 %vm401_vm2, %v393_v23 }
 0x1e9   : > { %v443_v25 = vpop.f32.mrb[0].mxu0 }
 0x1ea   : > { %v444_v27 = vadd.f32 %v443_v25, %v399_v24  ;;  %v627_v28 = vpop.f32.mrb[1].mxu0 }
 0x1eb   : > { %v446_v29 = vpop.f32.mrb[2].mxu0 }
 0x1ec   : > { %v450_v30 = vmul.f32 %v449_v26, %v444_v27  ;;  %v628_v31 = vpop.f32.mrb[3].mxu0 }
 0x1ee   : > { %451 = vst [vmem:[%s346_s15] sm:$0xff] %v450_v30 }
 0x1ef   : > { %776 = shalt.err (!%p773_p2)
}
 0x1f0   : > { %s777_s20 = scalar_lea.hbm %s1082_s17, 128  ;;  %s781_s8 = scalar_lea.hbm %s1137_s6, 256 }
 0x1f1   : > { %p778_p9 = scmp.ne.s32.totalorder %s1082_s17, %s777_s20  ;;  %p782_p6 = scmp.lt.u32.totalorder %s1082_s17, %s1137_s6 }
 0x1f2   : > { %p783_p13 = scmp.lt.u32.totalorder %s781_s8, %s777_s20  ;;  %p785_p0 = scmp.lt.u32.totalorder %s777_s20, %s1082_s17 }
 0x1f3   : > { %p779_p11 = pnand %p778_p9, %p1154_p5 }
 0x1f4   : > { %p784_p8 = por %p783_p13, %p782_p6 }
 0x1f5   : > { %p780_p3 = pneg %p779_p11 }
 0x1f6   : > { %p786_p7 = por %p785_p0, %p784_p8 }
 0x1f8   : > { %p787_p4 = pnand %p786_p7, %p780_p3 }
 0x1fa   : > { %790 = shalt.err (!%p787_p4)
}
 0x1fb   : > { %633 = dma.vmem_to_hbm [thread:$0]  (%p1154_p5), %s1084_s27, 128, %s1082_s17, %s453_s14  }
 0x1fc PF: > { %s479_s15 = sand.u32 1, %s829_s21   ;;  %p1155_p10 = scmp.ne.s32.totalorder %s1145_s12, 0 }
 0x1fd   : > { %p1156_p12 = scmp.ge.s32.totalorder %s849_s26, 2  ;;  %s480_s30 = scalar_lea.sflag [#allocation5], %s479_s15 }
 0x1ff   : > { %p643_p1 = pnand %p1156_p12, %p1155_p10 }
 0x201   : > { %824 = dma.done.wait (!%p643_p1), %s480_s30, 128  }
 0x202   : > { %826 = vsyncadd (!%p643_p1), %s480_s30, 4294967168  ;;  %s25_s26 = sadd.s32 1, %s849_s26   ;;  %s1157_s21 = smov %s833_s22 }
 0x203   : > { %p22_p2 = scmp.ge.s32.totalorder %s25_s26, 4   ;;  %s1158_s22 = smov %s837_s23 }
 0x204   : > { %s1159_s23 = smov %s948_s11  ;;  %s1160_s24 = smov %s845_s25 }
 0x205   : > { %s1161_s25 = smov %s1163_s29  ;;  %24 = sbr.rel (!%p22_p2) target bundleno = 10 (0xa), region = 112 }
 0x20c   :  { %485 = vsyncpa [#allocation4], 1 }
 0x20d   :  { %487 = vsyncpa [#allocation4 + $0x1], 1 }
 0x20e   :  { %488 = vsyncpa [#allocation7], 1 }
 0x20f   :  { %490 = vsyncpa [#allocation7 + $0x1], 1 }
 0x210   :  { %491 = vsyncpa [#allocation5], 1 }
 0x211   :  { %493 = vsyncpa [#allocation5 + $0x1], 1 }

</bundles_post_ra>
